<compile_context>
chip_gen: v7x
topology: tpu7x:2x2x1
jax: 0.10.0
libtpu: 0.0.40
codegen_flags: <defaults>
</compile_context>

<pallas_src>
import jax
import jax.numpy as jnp
import numpy as np
from jax.experimental import pallas as pl
from jax.experimental.pallas import tpu as pltpu


def _round_up(x, m):
    return (x + m - 1) // m * m


# Conservative budget: fits v7x's 64 MiB physical VMEM with headroom for Mosaic scratch.
_VMEM_BUDGET = 40 * 1024 * 1024


# ------------------------------ kernel ---------------------------------------


def _generator_kernel(x_ref, w_ref, b_ref, o_ref, m_ref, l_ref):
    """One (row_block, vocab_tile) step of fused projection + log_softmax.

    x_ref: (tm, D)  w_ref: (D, tv)  b_ref: (1, tv)  o_ref: (tm, V) resident slab
    m_ref/l_ref: (tm, 1) f32 online-logsumexp state (running max / running sum).
    """
    j = pl.program_id(1)
    nj = pl.num_programs(1)
    tv = w_ref.shape[-1]

    @pl.when(j == 0)
    def _init():
        m_ref[...] = jnp.full_like(m_ref, -jnp.inf)
        l_ref[...] = jnp.zeros_like(l_ref)

    # MXU matmul (bf16 operands on the fast path), f32 accumulate + f32 bias add.
    z = jnp.dot(x_ref[...], w_ref[...], preferred_element_type=jnp.float32)
    z = z + b_ref[...].astype(jnp.float32)

    # Online logsumexp update (exp evaluated exactly once per element).
    m_prev = m_ref[...]
    m_new = jnp.maximum(m_prev, jnp.max(z, axis=-1, keepdims=True))
    l_ref[...] = l_ref[...] * jnp.exp(m_prev - m_new) + jnp.sum(
        jnp.exp(z - m_new), axis=-1, keepdims=True)
    m_ref[...] = m_new

    # Stream the unnormalized logits into the VMEM-resident output slab.
    if tv == o_ref.shape[-1]:          # single vocab tile (static branch)
        o_ref[...] = z.astype(o_ref.dtype)
    else:
        start = pl.multiple_of(j * tv, 128)
        o_ref[:, pl.ds(start, tv)] = z.astype(o_ref.dtype)

    # Finalize: subtract lse from the whole resident slab (VPU subtract, no exp).
    @pl.when(j == nj - 1)
    def _finalize():
        lse = m_ref[...] + jnp.log(l_ref[...])
        o_ref[...] = (o_ref[...].astype(jnp.float32) - lse).astype(o_ref.dtype)


# ------------------------------ tile selection --------------------------------


def _choose_tiles(n, d, v_pad, row_block, v_block, x_bytes, w_bytes, out_bytes,
                  budget):
    """Pick (row tile tm, vocab tile tv) so all buffers fit the VMEM budget."""
    row_block = max(8, int(row_block))
    tm = max(8, min(_round_up(n, 8), (row_block // 8) * 8))

    def fixed_cost(t):
        # resident (t, v_pad) output slab + x block (both double-buffered) + m/l scratch
        return 2 * t * v_pad * out_bytes + 2 * t * d * x_bytes + 4 * t * 4

    while tm > 8 and fixed_cost(tm) > budget // 2:
        tm = max(8, ((tm // 2) // 8) * 8)

    cap = v_pad if v_block is None else max(128, min(_round_up(int(v_block), 128), v_pad))
    rem = max(budget - fixed_cost(tm), 0)

    def fits(t):
        return t <= cap and 2 * (d * t * w_bytes + t * 4) <= rem

    # Prefer vocab tiles that are multiples of 256 (v6e/v7x MXU width), largest
    # first, then multiples of 128; 128 always divides v_pad.
    tv = 128
    for step in (256, 128):
        cands = [t for t in range(step, v_pad + 1, step) if v_pad % t == 0]
        good = [t for t in sorted(cands, reverse=True) if fits(t)]
        if good:
            tv = good[0]
            break
    return tm, tv


# ------------------------------ wrapper ---------------------------------------


def generator_forward(x, w, b, *, row_block=256, v_block=None,
                      mxu_dtype=jnp.bfloat16, out_dtype=jnp.float32,
                      vmem_budget_bytes=_VMEM_BUDGET):
    """log_softmax(x @ w + b, axis=-1).

    x: (..., D)   activations
    w: (D, V)     projection weight (transposed vs. torch's (V, D) Linear layout)
    b: (V,)       projection bias
    """
    *lead, d = x.shape
    v = w.shape[1]
    out_dtype = jnp.dtype(out_dtype)

    xf = x.reshape(-1, d)
    n = xf.shape[0]

    # bf16 MXU operands: higher issue rate + half the weight HBM traffic on all
    # generations; accumulation, bias add and softmax stay in f32.
    if mxu_dtype is not None:
        xf = xf.astype(mxu_dtype)
        w = w.astype(mxu_dtype)
    b2 = b.astype(jnp.float32).reshape(1, v)

    # Pad W/b (only) along the vocab dim to a lane multiple so it can be tiled.
    # Padded columns get a huge negative bias -> contribute ~0 to the logsumexp;
    # the output keeps its true (n, v) width (tail-column stores are masked).
    v_pad = _round_up(v, 128)
    if v_pad != v:
        w = jnp.pad(w, ((0, 0), (0, v_pad - v)))
        b2 = jnp.pad(b2, ((0, 0), (0, v_pad - v)), constant_values=-1e30)

    x_bytes = jnp.dtype(xf.dtype).itemsize
    w_bytes = jnp.dtype(w.dtype).itemsize
    o_bytes = out_dtype.itemsize
    tm, tv = _choose_tiles(n, d, v_pad, row_block, v_block,
                           x_bytes, w_bytes, o_bytes, vmem_budget_bytes)

    # Ragged row tail handled by Pallas boundary masking: no x pad, no [:N] slice.
    grid = (pl.cdiv(n, tm), v_pad // tv)

    # Explicit scoped-VMEM limit: defaults (16 MiB v5e / 32 MiB v6e, v7x) are far
    # below physical and would reject or shrink the intended tiles.
    est = (2 * tm * v_pad * o_bytes + 2 * tm * d * x_bytes
           + 2 * (d * tv * w_bytes + tv * 4) + 4 * tm * 4)
    vmem_limit = int(min(max(est + est // 4 + (4 << 20), 32 << 20), 64 << 20))

    out = pl.pallas_call(
        _generator_kernel,
        out_shape=jax.ShapeDtypeStruct((n, v), out_dtype),
        grid_spec=pltpu.PrefetchScalarGridSpec(
            num_scalar_prefetch=0,
            grid=grid,
            in_specs=[
                pl.BlockSpec((tm, d), lambda i, j: (i, 0)),    # activations (row block)
                pl.BlockSpec((d, tv), lambda i, j: (0, j)),    # weight vocab tile
                pl.BlockSpec((1, tv), lambda i, j: (0, j)),    # bias vocab tile
            ],
            # Constant block index along the vocab axis -> whole (tm, v_pad) row
            # slab stays resident in VMEM across the reduction (accumulator).
            out_specs=pl.BlockSpec((tm, v_pad), lambda i, j: (i, 0)),
            scratch_shapes=[pltpu.VMEM((tm, 1), jnp.float32),   # running max
                            pltpu.VMEM((tm, 1), jnp.float32)],  # running sum
        ),
        compiler_params=pltpu.CompilerParams(
            dimension_semantics=("parallel", "arbitrary"),
            vmem_limit_bytes=vmem_limit,
        ),
    )(xf, w, b2)

    return out.reshape(*lead, v)


# ------------------------------ main ------------------------------------------


if __name__ == "__main__":
    B, S, D, V = 2, 8, 32, 512  # batch, seq, d_model, vocab

    key = jax.random.PRNGKey(0)
    kx, kw, kb = jax.random.split(key, 3)
    x = jax.random.normal(kx, (B, S, D), jnp.float32)
    w = 0.05 * jax.random.normal(kw, (D, V), jnp.float32)  # torch Linear weight, transposed
    b = 0.05 * jax.random.normal(kb, (V,), jnp.float32)

    ref = jax.nn.log_softmax(x @ w + b, axis=-1)

    # Fast path: bf16 MXU operands, weight-resident single vocab tile.
    out = jax.block_until_ready(generator_forward(x, w, b))
    assert out.shape == (B, S, V) and out.dtype == jnp.float32
    np.testing.assert_allclose(np.asarray(out), np.asarray(ref), rtol=2e-2, atol=2e-2)

    # Tiled path: force multiple row blocks and vocab tiles to exercise the
    # streaming online-logsumexp; f32 operands for a tight comparison.
    out_tiled = jax.block_until_ready(
        generator_forward(x, w, b, row_block=8, v_block=128, mxu_dtype=None))
    np.testing.assert_allclose(np.asarray(out_tiled), np.asarray(ref),
                               rtol=1e-3, atol=1e-3)

    print("KERNEL_OK")
</pallas_src>

<mosaic_0001>
module attributes {stable_mosaic.version = 11 : i64} {
  func.func @_generator_kernel(%arg0: i32, %arg1: i32, %arg2: memref<16x32xbf16, #tpu.memory_space<vmem>>, %arg3: memref<32x512xbf16, #tpu.memory_space<vmem>>, %arg4: memref<1x512xf32, #tpu.memory_space<vmem>>, %arg5: memref<16x512xf32, #tpu.memory_space<vmem>>, %arg6: memref<16x1xf32, #tpu.memory_space<vmem>>, %arg7: memref<16x1xf32, #tpu.memory_space<vmem>>) attributes {dimension_semantics = [#tpu.dimension_semantics<parallel>, #tpu.dimension_semantics<arbitrary>], iteration_bounds = array<i64: 1, 1>, scalar_prefetch = 0 : i64, scratch_operands = 2 : i64, tpu.core_type = #tpu.core_type<tc>, window_params = [{transform_indices = @transform_0, window_bounds = array<i64: 16, 32>}, {transform_indices = @transform_1, window_bounds = array<i64: 32, 512>}, {transform_indices = @transform_2, window_bounds = array<i64: 1, 512>}, {transform_indices = @transform_3, window_bounds = array<i64: 16, 512>}]} {
    %c0_i32 = arith.constant 0 : i32
    %0 = arith.cmpi eq, %arg1, %c0_i32 : i32
    %1 = arith.extui %0 : i1 to i32
    %c0_i32_0 = arith.constant 0 : i32
    %2 = arith.cmpi ne, %1, %c0_i32_0 : i32
    scf.if %2 {
      %cst_20 = arith.constant 0xFF800000 : f32
      %29 = vector.broadcast %cst_20 : f32 to vector<16x1xf32>
      %c0_21 = arith.constant 0 : index
      %c0_22 = arith.constant 0 : index
      %30 = vector.load %arg6[%c0_21, %c0_22] : memref<16x1xf32, #tpu.memory_space<vmem>>, vector<16x1xf32>
      tpu.vector_store %arg6[%c0_21, %c0_22], %29 {strides = array<i32>} : memref<16x1xf32, #tpu.memory_space<vmem>>, vector<16x1xf32>,
      %cst_23 = arith.constant 0.000000e+00 : f32
      %31 = vector.broadcast %cst_23 : f32 to vector<16x1xf32>
      %c0_24 = arith.constant 0 : index
      %c0_25 = arith.constant 0 : index
      %32 = vector.load %arg7[%c0_24, %c0_25] : memref<16x1xf32, #tpu.memory_space<vmem>>, vector<16x1xf32>
      tpu.vector_store %arg7[%c0_24, %c0_25], %31 {strides = array<i32>} : memref<16x1xf32, #tpu.memory_space<vmem>>, vector<16x1xf32>,
    } else {
    }
    %c0 = arith.constant 0 : index
    %c0_1 = arith.constant 0 : index
    %3 = vector.load %arg2[%c0, %c0_1] : memref<16x32xbf16, #tpu.memory_space<vmem>>, vector<16x32xbf16>
    %c0_2 = arith.constant 0 : index
    %c0_3 = arith.constant 0 : index
    %4 = vector.load %arg3[%c0_2, %c0_3] : memref<32x512xbf16, #tpu.memory_space<vmem>>, vector<32x512xbf16>
    %cst = arith.constant dense<0.000000e+00> : vector<16x512xf32>
    %5 = tpu.matmul %3, %4, %cst {dimension_numbers = #tpu.dot_dimension_numbers<[1], [0], [0], [1], [0, 0, 1, 1], [], []>} : vector<16x32xbf16>, vector<32x512xbf16>, vector<16x512xf32> -> vector<16x512xf32>
    %c0_4 = arith.constant 0 : index
    %c0_5 = arith.constant 0 : index
    %6 = vector.load %arg4[%c0_4, %c0_5] : memref<1x512xf32, #tpu.memory_space<vmem>>, vector<1x512xf32>
    %7 = vector.broadcast %6 : vector<1x512xf32> to vector<16x512xf32>
    %8 = arith.addf %5, %7 : vector<16x512xf32>
    %c0_6 = arith.constant 0 : index
    %c0_7 = arith.constant 0 : index
    %9 = vector.load %arg6[%c0_6, %c0_7] : memref<16x1xf32, #tpu.memory_space<vmem>>, vector<16x1xf32>
    %cst_8 = arith.constant dense<0xFF800000> : vector<16xf32>
    %10 = vector.multi_reduction <maximumf>, %8, %cst_8 [1] : vector<16x512xf32> to vector<16xf32>
    %11 = vector.shape_cast %10 : vector<16xf32> to vector<16x1xf32>
    %12 = arith.maximumf %9, %11 : vector<16x1xf32>
    %c0_9 = arith.constant 0 : index
    %c0_10 = arith.constant 0 : index
    %13 = vector.load %arg7[%c0_9, %c0_10] : memref<16x1xf32, #tpu.memory_space<vmem>>, vector<16x1xf32>
    %14 = arith.subf %9, %12 : vector<16x1xf32>
    %15 = math.exp %14 : vector<16x1xf32>
    %16 = arith.mulf %13, %15 : vector<16x1xf32>
    %17 = vector.broadcast %12 : vector<16x1xf32> to vector<16x512xf32>
    %18 = arith.subf %8, %17 : vector<16x512xf32>
    %19 = math.exp %18 : vector<16x512xf32>
    %cst_11 = arith.constant dense<0.000000e+00> : vector<16xf32>
    %20 = vector.multi_reduction <add>, %19, %cst_11 [1] : vector<16x512xf32> to vector<16xf32>
    %21 = vector.shape_cast %20 : vector<16xf32> to vector<16x1xf32>
    %22 = arith.addf %16, %21 : vector<16x1xf32>
    %c0_12 = arith.constant 0 : index
    %c0_13 = arith.constant 0 : index
    %23 = vector.load %arg7[%c0_12, %c0_13] : memref<16x1xf32, #tpu.memory_space<vmem>>, vector<16x1xf32>
    tpu.vector_store %arg7[%c0_12, %c0_13], %22 {strides = array<i32>} : memref<16x1xf32, #tpu.memory_space<vmem>>, vector<16x1xf32>,
    %c0_14 = arith.constant 0 : index
    %c0_15 = arith.constant 0 : index
    %24 = vector.load %arg6[%c0_14, %c0_15] : memref<16x1xf32, #tpu.memory_space<vmem>>, vector<16x1xf32>
    tpu.vector_store %arg6[%c0_14, %c0_15], %12 {strides = array<i32>} : memref<16x1xf32, #tpu.memory_space<vmem>>, vector<16x1xf32>,
    %c0_16 = arith.constant 0 : index
    %c0_17 = arith.constant 0 : index
    %25 = vector.load %arg5[%c0_16, %c0_17] : memref<16x512xf32, #tpu.memory_space<vmem>>, vector<16x512xf32>
    tpu.vector_store %arg5[%c0_16, %c0_17], %8 {strides = array<i32>} : memref<16x512xf32, #tpu.memory_space<vmem>>, vector<16x512xf32>,
    %c0_i32_18 = arith.constant 0 : i32
    %26 = arith.cmpi eq, %arg1, %c0_i32_18 : i32
    %27 = arith.extui %26 : i1 to i32
    %c0_i32_19 = arith.constant 0 : i32
    %28 = arith.cmpi ne, %27, %c0_i32_19 : i32
    scf.if %28 {
      %c0_20 = arith.constant 0 : index
      %c0_21 = arith.constant 0 : index
      %29 = vector.load %arg6[%c0_20, %c0_21] : memref<16x1xf32, #tpu.memory_space<vmem>>, vector<16x1xf32>
      %c0_22 = arith.constant 0 : index
      %c0_23 = arith.constant 0 : index
      %30 = vector.load %arg7[%c0_22, %c0_23] : memref<16x1xf32, #tpu.memory_space<vmem>>, vector<16x1xf32>
      %31 = math.log %30 : vector<16x1xf32>
      %32 = arith.addf %29, %31 : vector<16x1xf32>
      %c0_24 = arith.constant 0 : index
      %c0_25 = arith.constant 0 : index
      %33 = vector.load %arg5[%c0_24, %c0_25] : memref<16x512xf32, #tpu.memory_space<vmem>>, vector<16x512xf32>
      %34 = vector.broadcast %32 : vector<16x1xf32> to vector<16x512xf32>
      %35 = arith.subf %33, %34 : vector<16x512xf32>
      %c0_26 = arith.constant 0 : index
      %c0_27 = arith.constant 0 : index
      %36 = vector.load %arg5[%c0_26, %c0_27] : memref<16x512xf32, #tpu.memory_space<vmem>>, vector<16x512xf32>
      tpu.vector_store %arg5[%c0_26, %c0_27], %35 {strides = array<i32>} : memref<16x512xf32, #tpu.memory_space<vmem>>, vector<16x512xf32>,
    } else {
    }
    return
  }
  func.func @transform_0(%arg0: i32, %arg1: i32) -> (i32, i32) {
    %c0_i32 = arith.constant 0 : i32
    %c0_i32_0 = arith.constant 0 : i32
    return %arg0, %c0_i32 : i32, i32
  }
  func.func @transform_1(%arg0: i32, %arg1: i32) -> (i32, i32) {
    %c0_i32 = arith.constant 0 : i32
    %c0_i32_0 = arith.constant 0 : i32
    return %c0_i32, %arg1 : i32, i32
  }
  func.func @transform_2(%arg0: i32, %arg1: i32) -> (i32, i32) {
    %c0_i32 = arith.constant 0 : i32
    %c0_i32_0 = arith.constant 0 : i32
    return %c0_i32, %arg1 : i32, i32
  }
  func.func @transform_3(%arg0: i32, %arg1: i32) -> (i32, i32) {
    %c0_i32 = arith.constant 0 : i32
    %c0_i32_0 = arith.constant 0 : i32
    return %arg0, %c0_i32 : i32, i32
  }
}

</mosaic_0001>

<bundles_post_ra>
// kernel: tpu_custom_call.1
= control target key start
LH: loop header
LB: loop body
LE: loop exit
PB: predicated region body
PF: predicated region fallthrough
CT: control target
= control target key end

     0   :  { %8 = vsyncpa [#allocation5], 0  ;;  %s621_s0 = inlined_call_operand.hbm [shape: bf16[16,32], index: 0, kind: input, shape index: {}]   ;;  %s622_s1 = inlined_call_operand.hbm [shape: bf16[32,512], index: 1, kind: input, shape index: {}]   ;;  %s623_s2 = inlined_call_operand.vmem [shape: f32[1,512], index: 2, kind: input, shape index: {}]   ;;  %s624_s3 = inlined_call_operand.hbm [shape: f32[16,512], index: 3, kind: output, shape index: {}]  }
   0x1   :  { %9 = vsyncpa [#allocation8], 0 }
   0x2   :  { %10 = vsyncpa [#allocation6], 0  ;;  %s502_s12 = smov [#allocation4]   ;;  %s430_s16 = scalar_lea.hbm %s621_s0, 128 }
   0x3   :  { %s16_s13 = sshll.u32 %s502_s12, 4  ;;  %p431_p0 = scmp.ne.s32.totalorder %s621_s0, %s430_s16  ;;  %s17_s13 = int_to_ptr.vmem [resolvable:$true] %s16_s13 }
   0x4   :  { %p434_p1 = scmp.lt.u32.totalorder %s430_s16, %s621_s0 }
   0x6   :  { %p436_p2 = pnand %p434_p1, %p431_p0 }
   0x8   :  { %439 = shalt.err (!%p436_p2)
}
   0x9   :  { %s440_s21 = scalar_lea.vmem %s17_s13, 128  ;;  %p445_p4 = scmp.lt.s32.totalorder %s17_s13, %s17_s13 }
   0xa   :  { %p441_p3 = scmp.ne.s32.totalorder %s17_s13, %s440_s21  ;;  %p446_p5 = scmp.lt.s32.totalorder %s440_s21, %s440_s21 }
   0xc   :  { %p447_p6 = por %p446_p5, %p445_p4 }
   0xe   :  { %p448_p7 = pnand %p447_p6, %p441_p3 }
  0x10   :  { %451 = shalt.err (!%p448_p7)
}
  0x11   :  { %s503_s22 = smov 64   ;;  %s504_s23 = smov 4  }
  0x12   :  { %22 = dma.hbm_to_vmem [thread:$0]  %s621_s0, 128, %s17_s13, [#allocation5], %s503_s22, %s503_s22, %s504_s23  }
  0x13   :  { %s505_s26 = smov [#allocation7]   ;;  %s452_s30 = scalar_lea.hbm %s622_s1, 1024 }
  0x14   :  { %s28_s27 = sshll.u32 %s505_s26, 4  ;;  %p453_p8 = scmp.ne.s32.totalorder %s622_s1, %s452_s30  ;;  %s29_s27 = int_to_ptr.vmem [resolvable:$true] %s28_s27 }
  0x15   :  { %p456_p9 = scmp.lt.u32.totalorder %s452_s30, %s622_s1 }
  0x17   :  { %p458_p10 = pnand %p456_p9, %p453_p8 }
  0x19   :  { %461 = shalt.err (!%p458_p10)
}
  0x1a   :  { %s462_s8 = scalar_lea.vmem %s29_s27, 1024  ;;  %p467_p12 = scmp.lt.s32.totalorder %s29_s27, %s29_s27 }
  0x1b   :  { %p463_p11 = scmp.ne.s32.totalorder %s29_s27, %s462_s8  ;;  %p468_p13 = scmp.lt.s32.totalorder %s462_s8, %s462_s8 }
  0x1d   :  { %p469_p0 = por %p468_p13, %p467_p12 }
  0x1f   :  { %p470_p1 = pnand %p469_p0, %p463_p11 }
  0x21   :  { %473 = shalt.err (!%p470_p1)
}
  0x22   :  { %s506_s0 = smov 256   ;;  %s507_s9 = smov 16  }
  0x23   :  { %34 = dma.hbm_to_vmem [thread:$0]  %s622_s1, 1024, %s29_s27, [#allocation8], %s506_s0, %s506_s0, %s507_s9  }
  0x24   :  { %496 = dma.done.wait [#allocation5], 128  }
  0x25   :  { %497 = vsyncadd [#allocation5], 4294967168 }
  0x26   :  { %498 = dma.done.wait [#allocation8], 1024  }
  0x27   :  { %499 = vsyncadd [#allocation8], 4294966272  ;;  %v508_v0 = vmov 0   ;;  %v393_v1 = vld [vmem:[#allocation7 + $0x4] ss:$16 sps:$4 sm:$0xff]   ;;  %v405_v9 = vld [vmem:[#allocation4] sm:$0xff]   ;;  %v65_v11 = vlaneseq }
  0x28   :  { %166 = vmatprep.mubr.bf16.mxu0 %v508_v0  ;;  %209 = vmatprep.mubr.bf16.mxu1 %v508_v0  ;;  %v395_v2 = vld [vmem:[#allocation7 + $0xc] ss:$16 sps:$4 sm:$0xff]   ;;  %v397_v3 = vld [vmem:[#allocation7] ss:$16 sps:$4 sm:$0xff]   ;;  %v398_v4 = vld [vmem:[#allocation7 + $0x8] ss:$16 sps:$4 sm:$0xff]  }
  0x29   :  { %391 = vset.pattern.permute.xlu1 %v508_v0  ;;  %392 = vset.pattern.permute.xlu0 %v508_v0  ;;  %v399_v5 = vld [vmem:[#allocation7 + $0x24] ss:$16 sps:$4 sm:$0xff]   ;;  %v401_v6 = vld [vmem:[#allocation7 + $0x2c] ss:$16 sps:$4 sm:$0xff]   ;;  %v403_v7 = vld [vmem:[#allocation7 + $0x20] ss:$16 sps:$4 sm:$0xff]  }
  0x2a   :  { %134 = vmatprep.subr.bf16.mxu0 %v393_v1  ;;  %177 = vmatprep.subr.bf16.mxu1 %v395_v2  ;;  %v404_v8 = vld [vmem:[#allocation7 + $0x28] ss:$16 sps:$4 sm:$0xff]   ;;  %vm130_vm0 = vcmask 261120   ;;  %vm48_vm1 = vcmask 7168   ;;  %v509_v10 = vmov -inf   ;;  %v66_v12 = vshrl.u32 %v65_v11, 7 }
  0x2b   :  { %135 = vmatpush1.bf16.msra.mxu0 %v397_v3  ;;  %178 = vmatpush1.bf16.msra.mxu1 %v398_v4  ;;  %49 = vst.msk [vmem:[#allocation2] sm:$0xff] %vm48_vm1, %v509_v10  ;;  %50 = vst.msk [vmem:[#allocation2 + $0x8] sm:$0xff] %vm48_vm1, %v509_v10  ;;  %v63_v15 = vld [vmem:[%s623_s2] sm:$0xf]  ;;  %v510_v44 = vmov 0.0   ;;  %s511_s2 = smov [#allocation9]  }
  0x2c   :  { %136 = vmatprep.subr.bf16.mxu0 %v399_v5  ;;  %179 = vmatprep.subr.bf16.mxu1 %v401_v6  ;;  %v67_v13 = vsub.s32 0, %v66_v12  ;;  %v75_v14 = vsub.s32 2, %v66_v12  ;;  %v71_v16 = vsub.s32 1, %v66_v12  ;;  %v79_v17 = vsub.s32 3, %v66_v12  ;;  %51 = vst.msk [vmem:[#allocation3] sm:$0xff] %vm48_vm1, %v510_v44  ;;  %52 = vst.msk [vmem:[#allocation3 + $0x8] sm:$0xff] %vm48_vm1, %v510_v44 }
  0x2d   :  { %s355_s13 = sshll.u32 %s511_s2, 4  ;;  %s356_s13 = int_to_ptr.vmem [resolvable:$true] %s355_s13 }
  0x2e   :  { %v68_v18 = vrot.slane %v63_v15, %v67_v13  ;;  %v76_v19 = vrot.slane %v63_v15, %v75_v14  ;;  %v72_v20 = vrot.slane %v63_v15, %v71_v16  ;;  %v80_v21 = vrot.slane %v63_v15, %v79_v17  ;;  %s474_s14 = scalar_lea.vmem %s356_s13, 1024  ;;  %p479_p3 = scmp.lt.s32.totalorder %s356_s13, %s356_s13 }
  0x2f   :  { %137 = vmatpush1.bf16.msra.mxu0 %v403_v7  ;;  %180 = vmatpush1.bf16.msra.mxu1 %v404_v8  ;;  %p475_p2 = scmp.ne.s32.totalorder %s356_s13, %s474_s14  ;;  %p480_p4 = scmp.lt.s32.totalorder %s474_s14, %s474_s14 }
  0x31   :  { %p481_p5 = por %p480_p4, %p479_p3 }
  0x32   :  { %377 = vmatmul.mubr.msk.bf16.vlgmr.msra.gmra.mrb[0].mxu0 %vm130_vm0, %v405_v9  ;;  %378 = vmatmul.mubr.msk.bf16.vlgmr.msra.gmra.mrb[0].mxu1 %vm130_vm0, %v405_v9  ;;  %v220_v45 = vld [vmem:[#allocation2] sm:$0xff]  ;;  %v221_v48 = vld [vmem:[#allocation2 + $0x8] sm:$0xff] }
  0x33   :  { %p482_p6 = pnand %p481_p5, %p475_p2 }
 0x105   :  { %v168_v22 = vpop.f32.mrb[0].mxu0  ;;  %v211_v23 = vpop.f32.mrb[0].mxu1 }
 0x106   :  { %v563_v24 = vadd.f32 %v168_v22, %v68_v18  ;;  %v565_v25 = vadd.f32 %v211_v23, %v76_v19  ;;  %v170_v26 = vpop.f32.mrb[1].mxu0  ;;  %v213_v27 = vpop.f32.mrb[1].mxu1 }
 0x107   :  { %v567_v28 = vadd.f32 %v170_v26, %v72_v20  ;;  %v569_v29 = vadd.f32 %v213_v27, %v80_v21  ;;  %v172_v30 = vpop.f32.mrb[2].mxu0  ;;  %v215_v31 = vpop.f32.mrb[2].mxu1  ;;  %v234_v26 = vld [vmem:[#allocation3] sm:$0xff] }
 0x108   :  { %v571_v32 = vadd.f32 %v172_v30, %v68_v18  ;;  %v573_v33 = vadd.f32 %v215_v31, %v76_v19  ;;  %v174_v34 = vpop.f32.mrb[3].mxu0  ;;  %v217_v35 = vpop.f32.mrb[3].mxu1  ;;  %v222_v36 = vmax.f32 %v563_v24, %v565_v25 }
 0x109   :  { %v577_v37 = vadd.f32 %v174_v34, %v72_v20  ;;  %v579_v38 = vadd.f32 %v217_v35, %v80_v21  ;;  %v223_v39 = vmax.f32 %v567_v28, %v569_v29  ;;  %v235_v34 = vld [vmem:[#allocation3 + $0x8] sm:$0xff] }
 0x10a   :  { %v227_v41 = vmax.f32 %v571_v32, %v573_v33 }
 0x10b   :  { %v224_v40 = vmax.f32 %v222_v36, %v223_v39  ;;  %v228_v42 = vmax.f32 %v577_v37, %v579_v38 }
 0x10d   :  { %225 = vmax.xlane.f32.xlu0 %v224_v40  ;;  %v229_v43 = vmax.f32 %v227_v41, %v228_v42 }
 0x111   :  { %230 = vmax.xlane.f32.xlu0 %v229_v43 }
 0x19a   :  { %v226_v46 = vpop.xlane.xlu0 %225 }
 0x19b   :  { %v232_v47 = vmax.f32 %v220_v45, %v226_v46 }
 0x19d   :  { %v236_v49 = vsub.f32 %v220_v45, %v232_v47  ;;  %293 = vst.msk [vmem:[#allocation2] sm:$0xff] %vm48_vm1, %v232_v47  ;;  %246 = vperm.xlu1 %391, %v232_v47  }
 0x19e   :  { %v231_v50 = vpop.xlane.xlu0 %230 }
 0x19f   :  { %v233_v51 = vmax.f32 %v221_v48, %v231_v50  ;;  %v238_v21 = vmul.f32 1.442695, %v236_v49 }
 0x1a1   :  { %v237_v52 = vsub.f32 %v221_v48, %v233_v51  ;;  %294 = vst.msk [vmem:[#allocation2 + $0x8] sm:$0xff] %vm48_vm1, %v233_v51  ;;  %251 = vperm.xlu1 %391, %v233_v51  }
 0x1a3   :  { %v240_v22 = vmul.f32 1.442695, %v237_v52 }
 0x1a4   :  { %v306_v45 = vld [vmem:[#allocation2] sm:$0xff] }
 0x1a8   :  { %v307_v49 = vld [vmem:[#allocation2 + $0x8] sm:$0xff] }
 0x21c   :  { %v247_v53 = vpop.permute.xlu1 %246 }
 0x21d   :  { %v254_v54 = vsub.f32 %v563_v24, %v247_v53  ;;  %v255_v55 = vsub.f32 %v567_v28, %v247_v53  ;;  %v256_v56 = vsub.f32 %v565_v25, %v247_v53  ;;  %v257_v57 = vsub.f32 %v569_v29, %v247_v53 }
 0x21f   :  { %v262_v58 = vmul.f32 1.442695, %v254_v54  ;;  %v264_v59 = vmul.f32 1.442695, %v255_v55  ;;  %v266_v60 = vmul.f32 1.442695, %v256_v56 }
 0x220   :  { %v268_v61 = vmul.f32 1.442695, %v257_v57  ;;  %v252_v62 = vpop.permute.xlu1 %251 }
 0x221   :  { %406 = vpow2.f32 %v262_v58  ;;  %v258_v63 = vsub.f32 %v571_v32, %v252_v62  ;;  %v259_v0 = vsub.f32 %v577_v37, %v252_v62  ;;  %v260_v1 = vsub.f32 %v573_v33, %v252_v62 }
 0x222   :  { %408 = vpow2.f32 %v264_v59  ;;  %v261_v2 = vsub.f32 %v579_v38, %v252_v62 }
 0x223   :  { %410 = vpow2.f32 %v266_v60  ;;  %v270_v3 = vmul.f32 1.442695, %v258_v63  ;;  %v272_v4 = vmul.f32 1.442695, %v259_v0  ;;  %v274_v5 = vmul.f32 1.442695, %v260_v1 }
 0x224   :  { %412 = vpow2.f32 %v268_v61  ;;  %v276_v6 = vmul.f32 1.442695, %v261_v2 }
 0x225   :  { %414 = vpow2.f32 %v270_v3 }
 0x226   :  { %416 = vpow2.f32 %v272_v4 }
 0x227   :  { %418 = vpow2.f32 %v274_v5 }
 0x228   :  { %420 = vpow2.f32 %v276_v6 }
 0x229   :  { %422 = vpow2.f32 %v238_v21 }
 0x22a   :  { %424 = vpow2.f32 %v240_v22 }
 0x22b   :  { %v407_v7 = vpop.eup %406 }
 0x22c   :  { %v409_v8 = vpop.eup %408 }
 0x22d   :  { %v411_v9 = vpop.eup %410  ;;  %v278_v10 = vadd.f32 %v409_v8, %v407_v7 }
 0x22e   :  { %v413_v11 = vpop.eup %412 }
 0x22f   :  { %v415_v12 = vpop.eup %414  ;;  %v279_v13 = vadd.f32 %v411_v9, %v278_v10 }
 0x230   :  { %v417_v14 = vpop.eup %416 }
 0x231   :  { %v280_v15 = vadd.f32 %v413_v11, %v279_v13  ;;  %v283_v16 = vadd.f32 %v417_v14, %v415_v12  ;;  %v419_v17 = vpop.eup %418 }
 0x232   :  { %v421_v19 = vpop.eup %420 }
 0x233   :  { %281 = vadd.xlane.f32.xlu0 %v280_v15  ;;  %v284_v18 = vadd.f32 %v419_v17, %v283_v16  ;;  %v423_v23 = vpop.eup %422 }
 0x234   :  { %v242_v27 = vmul.f32 %v423_v23, %v234_v26  ;;  %v425_v30 = vpop.eup %424 }
 0x235   :  { %v285_v20 = vadd.f32 %v421_v19, %v284_v18  ;;  %v243_v36 = vmul.f32 %v425_v30, %v235_v34 }
 0x237   :  { %286 = vadd.xlane.f32.xlu1 %v285_v20 }
 0x2c0   :  { %v282_v31 = vpop.xlane.xlu0 %281 }
 0x2c1   :  { %v288_v35 = vadd.f32 %v282_v31, %v242_v27 }
 0x2c3   :  { %291 = vst.msk [vmem:[#allocation3] sm:$0xff] %vm48_vm1, %v288_v35 }
 0x2c4   :  { %v287_v39 = vpop.xlane.xlu1 %286 }
 0x2c5   :  { %v289_v40 = vadd.f32 %v287_v39, %v243_v36 }
 0x2c7   :  { %292 = vst.msk [vmem:[#allocation3 + $0x8] sm:$0xff] %vm48_vm1, %v289_v40 }
 0x2ca   :  { %v308_v41 = vld [vmem:[#allocation3] sm:$0xff] }
 0x2cb   :  { %426 = vlog2.f32 %v308_v41 }
 0x2ce   :  { %v309_v42 = vld [vmem:[#allocation3 + $0x8] sm:$0xff] }
 0x2cf   :  { %428 = vlog2.f32 %v309_v42 }
 0x2d5   :  { %v427_v43 = vpop.eup %426 }
 0x2d6   :  { %v311_v44 = vmul.f32 0.6931472, %v427_v43 }
 0x2d8   :  { %v314_v46 = vadd.f32 %v311_v44, %v306_v45 }
 0x2d9   :  { %v429_v47 = vpop.eup %428 }
 0x2da   :  { %326 = vperm.xlu0 %392, %v314_v46   ;;  %v313_v48 = vmul.f32 0.6931472, %v429_v47 }
 0x2dc   :  { %v315_v50 = vadd.f32 %v313_v48, %v307_v49 }
 0x2de   :  { %331 = vperm.xlu1 %391, %v315_v50  }
 0x359   :  { %v327_v51 = vpop.permute.xlu0 %326 }
 0x35a   :  { %v334_v52 = vsub.f32 %v563_v24, %v327_v51  ;;  %v335_v53 = vsub.f32 %v567_v28, %v327_v51  ;;  %v336_v54 = vsub.f32 %v565_v25, %v327_v51  ;;  %v337_v55 = vsub.f32 %v569_v29, %v327_v51 }
 0x35c   :  { %342 = vst [vmem:[#allocation9] sm:$0xff] %v334_v52  ;;  %343 = vst [vmem:[#allocation9 + $0x8] sm:$0xff] %v335_v53 }
 0x35d   :  { %344 = vst [vmem:[#allocation9 + $0x10] sm:$0xff] %v336_v54  ;;  %345 = vst [vmem:[#allocation9 + $0x18] sm:$0xff] %v337_v55  ;;  %v332_v56 = vpop.permute.xlu1 %331 }
 0x35e   :  { %v338_v57 = vsub.f32 %v571_v32, %v332_v56  ;;  %v339_v58 = vsub.f32 %v577_v37, %v332_v56  ;;  %v340_v59 = vsub.f32 %v573_v33, %v332_v56  ;;  %v341_v24 = vsub.f32 %v579_v38, %v332_v56 }
 0x360   :  { %346 = vst [vmem:[#allocation9 + $0x20] sm:$0xff] %v338_v57  ;;  %347 = vst [vmem:[#allocation9 + $0x28] sm:$0xff] %v339_v58 }
 0x361   :  { %348 = vst [vmem:[#allocation9 + $0x30] sm:$0xff] %v340_v59  ;;  %349 = vst [vmem:[#allocation9 + $0x38] sm:$0xff] %v341_v24 }
 0x362   :  { %485 = shalt.err (!%p482_p6)
}
 0x363   :  { %s486_s17 = scalar_lea.hbm %s624_s3, 1024 }
 0x364   :  { %p487_p7 = scmp.ne.s32.totalorder %s624_s3, %s486_s17  ;;  %p490_p8 = scmp.lt.u32.totalorder %s486_s17, %s624_s3 }
 0x366   :  { %p492_p9 = pnand %p490_p8, %p487_p7 }
 0x368   :  { %495 = shalt.err (!%p492_p9)
}
 0x369   :  { %s512_s22 = smov 512   ;;  %s513_s23 = smov 32  }
 0x36a   :  { %361 = dma.vmem_to_hbm [thread:$0]  %s356_s13, 1024, %s624_s3, [#allocation6], %s512_s22, %s512_s22, %s513_s23  }
 0x36b   :  { %500 = dma.done.wait [#allocation6], 1024  }
 0x36c   :  { %501 = vsyncadd [#allocation6], 4294966272 }
 0x36d   :  { %365 = vsyncpa [#allocation5], 1 }
 0x36e   :  { %366 = vsyncpa [#allocation8], 1 }
 0x36f   :  { %367 = vsyncpa [#allocation6], 1 }

</bundles_post_ra>
